<compile_context>
chip_gen: v6e
topology: v6e:2x2x1
jax: 0.10.0
libtpu: 0.0.40
codegen_flags: <defaults>
</compile_context>

<pallas_src>
import functools
import math

import jax
import jax.numpy as jnp
from jax.experimental import pallas as pl
from jax.experimental.pallas import tpu as pltpu


_SINGLE_BLOCK_BYTES = 2 * 1024 * 1024   # below this, skip the grid entirely
_TARGET_BLOCK_BYTES = 8 * 1024 * 1024   # aim for ~8 MiB per input-tile DMA


def _cdiv(a: int, b: int) -> int:
    return (a + b - 1) // b


def _round_up(x: int, m: int) -> int:
    return ((x + m - 1) // m) * m


def _round_down_to(x: int, m: int) -> int:
    return max(m, (x // m) * m)


def _tpu_memory_params():
    """Returns (vmem_tile_budget, vmem_limit_bytes, num_tensorcores)."""
    vmem_capacity = 64 * 1024 * 1024   # conservative default (v7x per-TC VMEM)
    num_cores = 2                      # conservative default: assume multi-TC
    try:
        info = pltpu.get_tpu_info()
        vmem_capacity = int(getattr(info, "vmem_capacity_bytes", vmem_capacity))
        for attr in ("num_tensorcores", "tensorcore_count", "num_cores", "core_count"):
            v = getattr(info, attr, None)
            if v:
                num_cores = int(v)
                break
        else:
            # Heuristic: 128 MiB parts (v5e/v6e) are single-TC; 64 MiB (v7x) has 2 TCs.
            num_cores = 1 if vmem_capacity >= 100 * 1024 * 1024 else 2
    except Exception:
        pass
    if vmem_capacity >= 100 * 1024 * 1024:
        # v5e / v6e: 128 MiB physical VMEM -> large tiles, generous scoped limit.
        return 64 * 1024 * 1024, 96 * 1024 * 1024, num_cores
    # v7x: 64 MiB per TensorCore -> keep tighter numbers with headroom.
    return 32 * 1024 * 1024, 48 * 1024 * 1024, num_cores


def _rmsnorm_kernel(x_ref, w_ref, o_ref, *, eps: float, x_dtype):
    # x_ref: (block_rows, dim), w_ref: (1, dim) pre-cast to output dtype,
    # o_ref: (block_rows, dim).
    x = x_ref[...].astype(jnp.float32)                    # x.float()
    ms = jnp.mean(x * x, axis=-1, keepdims=True)          # x.pow(2).mean(-1)
    normed = x * jax.lax.rsqrt(ms + eps)                  # x * rsqrt(ms + eps)
    normed = normed.astype(x_dtype)                       # .type_as(x)
    o_ref[...] = normed.astype(o_ref.dtype) * w_ref[...]  # * weight (promoted)


def rmsnorm(x: jax.Array, weight: jax.Array, eps: float = 1e-6,
            block_rows: int | None = None) -> jax.Array:
    """RMSNorm over the last axis of x, scaled by `weight` (shape (dim,))."""
    orig_shape = x.shape
    dim = orig_shape[-1]
    assert weight.shape == (dim,)

    # Match torch's `output * self.weight` dtype promotion.
    out_dtype = jnp.promote_types(x.dtype, weight.dtype)

    rows = math.prod(orig_shape[:-1]) if len(orig_shape) > 1 else 1
    x2d = x.reshape(rows, dim)
    # Pre-cast the weight once in the wrapper; the kernel does no per-step cast.
    w2d = weight.astype(out_dtype).reshape(1, dim)

    x_bytes = jnp.dtype(x.dtype).itemsize
    o_bytes = jnp.dtype(out_dtype).itemsize
    sublane = max(8, 32 // x_bytes)          # 8 for f32, 16 for bf16, 32 for int8
    f32_temp = 0 if x_bytes == 4 else 4      # f32 astype is a no-op for f32 inputs

    kernel = functools.partial(_rmsnorm_kernel, eps=eps, x_dtype=x.dtype)

    # --- Tiny-input path: whole problem fits comfortably in VMEM -> no grid. ---
    total_bytes = rows * dim * (x_bytes + o_bytes + f32_temp)
    if total_bytes <= _SINGLE_BLOCK_BYTES:
        out2d = pl.pallas_call(
            kernel,
            out_shape=jax.ShapeDtypeStruct((rows, dim), out_dtype),
        )(x2d, w2d)
        return out2d.reshape(orig_shape)

    # --- Tiled path ---
    vmem_tile_budget, vmem_limit_bytes, num_cores = _tpu_memory_params()

    # Double-buffered in + out tiles, plus f32 temporaries when x isn't f32.
    per_row_bytes = dim * (2 * x_bytes + 2 * o_bytes + f32_temp)

    if block_rows is None:
        br_budget = vmem_tile_budget // max(per_row_bytes, 1)
        br_dma = _TARGET_BLOCK_BYTES // max(dim * x_bytes, 1)  # ~8 MiB per input DMA
        br = _round_down_to(min(br_budget, br_dma), sublane)
    else:
        br = _round_down_to(block_rows, sublane)

    # Never bigger than needed.
    br = min(br, _round_up(rows, sublane))

    # Multi-TensorCore parts only: make sure there are enough grid steps that
    # each core gets >= 2 tiles (prefer 4) so prefetch/writeback overlap.
    if block_rows is None and num_cores > 1:
        for target_steps in (4 * num_cores, 2 * num_cores):
            if rows >= target_steps * sublane:
                if _cdiv(rows, br) < target_steps:
                    br = min(br, _round_down_to(_cdiv(rows, target_steps), sublane))
                break

    n_steps = _cdiv(rows, br)   # partial last block handled by Pallas (no padding)

    cost = pl.CostEstimate(
        flops=4 * rows * dim,
        transcendentals=rows,
        bytes_accessed=rows * dim * (x_bytes + o_bytes) + dim * o_bytes,
    )

    out2d = pl.pallas_call(
        kernel,
        out_shape=jax.ShapeDtypeStruct((rows, dim), out_dtype),
        grid_spec=pltpu.PrefetchScalarGridSpec(
            num_scalar_prefetch=0,
            grid=(n_steps,),
            in_specs=[
                pl.BlockSpec((br, dim), lambda i: (i, 0)),
                pl.BlockSpec((1, dim), lambda i: (0, 0)),   # weight stays resident
            ],
            out_specs=pl.BlockSpec((br, dim), lambda i: (i, 0)),
        ),
        compiler_params=pltpu.CompilerParams(
            dimension_semantics=("parallel",),
            vmem_limit_bytes=vmem_limit_bytes,
        ),
        cost_estimate=cost,
    )(x2d, w2d)

    return out2d.reshape(orig_shape)


def rmsnorm_ref(x, weight, eps=1e-6):
    xf = x.astype(jnp.float32)
    normed = xf * jax.lax.rsqrt(jnp.mean(xf * xf, axis=-1, keepdims=True) + eps)
    return normed.astype(x.dtype) * weight


if __name__ == "__main__":
    root = jax.random.PRNGKey(0)
    k1, k2, k3 = jax.random.split(root, 3)

    # 1) Small shape consistent with the module (single-block path).
    batch, seq, hidden = 2, 8, 32
    x = jax.random.normal(k1, (batch, seq, hidden), dtype=jnp.float32)
    weight = jnp.ones((hidden,), dtype=jnp.float32)   # nn.Parameter(torch.ones(dim))

    out = jax.block_until_ready(rmsnorm(x, weight, eps=1e-6))
    ref = rmsnorm_ref(x, weight, eps=1e-6)
    assert out.shape == x.shape and out.dtype == x.dtype
    assert jnp.allclose(out, ref, atol=1e-5, rtol=1e-5), "mismatch vs reference (small)"

    # 2) Modest larger shape: exercises the tiled path including a partial
    #    last block (rows = 5*130 = 650, not a multiple of the row tile).
    b2, s2, h2 = 5, 130, 512
    x2 = jax.random.normal(k2, (b2, s2, h2), dtype=jnp.float32)
    w2 = (1.0 + 0.01 * jax.random.normal(k3, (h2,))).astype(jnp.float32)

    out2 = jax.block_until_ready(rmsnorm(x2, w2, eps=1e-6))
    ref2 = rmsnorm_ref(x2, w2, eps=1e-6)
    assert out2.shape == x2.shape and out2.dtype == x2.dtype
    assert jnp.allclose(out2, ref2, atol=1e-5, rtol=1e-5), "mismatch vs reference (tiled)"

    print("KERNEL_OK")
</pallas_src>

<mosaic_0001>
module attributes {stable_mosaic.version = 11 : i64} {
  func.func @_rmsnorm_kernel(%arg0: memref<16x32xf32, #tpu.memory_space<vmem>>, %arg1: memref<1x32xf32, #tpu.memory_space<vmem>>, %arg2: memref<16x32xf32, #tpu.memory_space<vmem>>) attributes {dimension_semantics = [], scalar_prefetch = 0 : i64, scratch_operands = 0 : i64, tpu.core_type = #tpu.core_type<tc>} {
    %c0 = arith.constant 0 : index
    %c0_0 = arith.constant 0 : index
    %0 = vector.load %arg0[%c0, %c0_0] : memref<16x32xf32, #tpu.memory_space<vmem>>, vector<16x32xf32>
    %1 = arith.mulf %0, %0 : vector<16x32xf32>
    %cst = arith.constant dense<0.000000e+00> : vector<16xf32>
    %2 = vector.multi_reduction <add>, %1, %cst [1] : vector<16x32xf32> to vector<16xf32>
    %3 = vector.shape_cast %2 : vector<16xf32> to vector<16x1xf32>
    %cst_1 = arith.constant 3.200000e+01 : f32
    %4 = vector.broadcast %cst_1 : f32 to vector<16x1xf32>
    %5 = arith.divf %3, %4 : vector<16x1xf32>
    %cst_2 = arith.constant 9.99999997E-7 : f32
    %6 = vector.broadcast %cst_2 : f32 to vector<16x1xf32>
    %7 = arith.addf %5, %6 : vector<16x1xf32>
    %8 = math.rsqrt %7 : vector<16x1xf32>
    %9 = vector.broadcast %8 : vector<16x1xf32> to vector<16x32xf32>
    %10 = arith.mulf %0, %9 : vector<16x32xf32>
    %c0_3 = arith.constant 0 : index
    %c0_4 = arith.constant 0 : index
    %11 = vector.load %arg1[%c0_3, %c0_4] : memref<1x32xf32, #tpu.memory_space<vmem>>, vector<1x32xf32>
    %12 = vector.broadcast %11 : vector<1x32xf32> to vector<16x32xf32>
    %13 = arith.mulf %10, %12 : vector<16x32xf32>
    %c0_5 = arith.constant 0 : index
    %c0_6 = arith.constant 0 : index
    %14 = vector.load %arg2[%c0_5, %c0_6] : memref<16x32xf32, #tpu.memory_space<vmem>>, vector<16x32xf32>
    tpu.vector_store %arg2[%c0_5, %c0_6], %13 {strides = array<i32>} : memref<16x32xf32, #tpu.memory_space<vmem>>, vector<16x32xf32>,
    return
  }
}

</mosaic_0001>

<bundles_post_ra>
// kernel: tpu_custom_call.1
= control target key start
LH: loop header
LB: loop body
LE: loop exit
PB: predicated region body
PF: predicated region fallthrough
CT: control target
= control target key end

     0   :  { %7 = vsyncpa [#allocation3], 0  ;;  %s165_s0 = inlined_call_operand.hbm [shape: f32[16,32], index: 0, kind: input, shape index: {}]   ;;  %s166_s1 = inlined_call_operand.vmem [shape: f32[1,32], index: 1, kind: input, shape index: {}]   ;;  %s167_s2 = inlined_call_operand.hbm [shape: f32[16,32], index: 2, kind: output, shape index: {}]  }
   0x1   :  { %8 = vsyncpa [#allocation4], 0  ;;  %s127_s9 = smov [#allocation2]  }
   0x2   :  { %s14_s10 = sshll.u32 %s127_s9, 4  ;;  %s15_s10 = int_to_ptr.vmem [resolvable:$true] %s14_s10 }
   0x3   :  { %s91_s11 = scalar_lea.vmem %s15_s10, 256  ;;  %p96_p1 = scmp.lt.s32.totalorder %s15_s10, %s15_s10 }
   0x4   :  { %p92_p0 = scmp.ne.s32.totalorder %s15_s10, %s91_s11  ;;  %p97_p2 = scmp.lt.s32.totalorder %s91_s11, %s91_s11 }
   0x6   :  { %p98_p3 = por %p97_p2, %p96_p1 }
   0x8   :  { %p99_p4 = pnand %p98_p3, %p92_p0 }
   0xa   :  { %102 = shalt.err (!%p99_p4)
}
   0xb   :  { %s128_s12 = smov 128   ;;  %s129_s13 = smov 8  }
   0xc   :  { %20 = dma.hbm_to_vmem [thread:$0]  %s165_s0, 256, %s15_s10, [#allocation3], %s128_s12, %s128_s12, %s129_s13  }
   0xd   :  { %123 = dma.done.wait [#allocation3], 256  }
   0xe   :  { %124 = vsyncadd [#allocation3], 4294967040  ;;  %v26_v0 = vld [vmem:[#allocation2] sm:$0xff]  ;;  %vm30_vm0 = vcmask 261120   ;;  %v27_v1 = vld [vmem:[#allocation2 + $0x8] sm:$0xff]  ;;  %s130_s17 = smov [#allocation5]  }
   0xf   :  { %v28_v2 = vmul.f32 %v26_v0, %v26_v0  ;;  %v29_v3 = vmul.f32 %v27_v1, %v27_v1  ;;  %v74_v13 = vld [vmem:[%s166_s1] ss:$0 sm:$0xff]  ;;  %s62_s18 = sshll.u32 %s130_s17, 4  ;;  %s63_s18 = int_to_ptr.vmem [resolvable:$true] %s62_s18 }
  0x10   :  { %s103_s19 = scalar_lea.vmem %s63_s18, 256  ;;  %p108_p6 = scmp.lt.s32.totalorder %s63_s18, %s63_s18 }
  0x11   :  { %v31_v4 = vsel %vm30_vm0, %v28_v2, 0.0  ;;  %v34_v5 = vsel %vm30_vm0, %v29_v3, 0.0  ;;  %p104_p5 = scmp.ne.s32.totalorder %s63_s18, %s103_s19  ;;  %p109_p7 = scmp.lt.s32.totalorder %s103_s19, %s103_s19 }
  0x12   :  { %32 = vadd.xlane.f32.xlu0 %v31_v4 }
  0x13   :  { %p110_p8 = por %p109_p7, %p108_p6 }
  0x15   :  { %p111_p9 = pnand %p110_p8, %p104_p5 }
  0x16   :  { %35 = vadd.xlane.f32.xlu0 %v34_v5 }
  0x9b   :  { %v33_v6 = vpop.xlane.xlu0 %32 }
  0x9c   :  { %v38_v7 = vmul.f32 0.03125, %v33_v6 }
  0x9e   :  { %v40_v8 = vadd.f32 1e-06, %v38_v7 }
  0x9f   :  { %v36_v9 = vpop.xlane.xlu0 %35 }
  0xa0   :  { %79 = vrsqrt.f32 %v40_v8  ;;  %v39_v10 = vmul.f32 0.03125, %v36_v9 }
  0xa2   :  { %v41_v11 = vadd.f32 1e-06, %v39_v10 }
  0xa4   :  { %81 = vrsqrt.f32 %v41_v11 }
  0xad   :  { %v80_v12 = vpop.eup %79 }
  0xae   :  { %v44_v14 = vmul.f32 %v80_v12, %v26_v0 }
  0xb0   :  { %v53_v15 = vmul.f32 %v74_v13, %v44_v14 }
  0xb1   :  { %v82_v16 = vpop.eup %81 }
  0xb2   :  { %v45_v17 = vmul.f32 %v82_v16, %v27_v1  ;;  %55 = vst.msk [vmem:[#allocation5] sm:$0xff] %vm30_vm0, %v53_v15 }
  0xb4   :  { %v54_v18 = vmul.f32 %v74_v13, %v45_v17 }
  0xb6   :  { %56 = vst.msk [vmem:[#allocation5 + $0x8] sm:$0xff] %vm30_vm0, %v54_v18 }
  0xb7   :  { %114 = shalt.err (!%p111_p9)
}
  0xb8   :  { %68 = dma.vmem_to_hbm [thread:$0]  %s63_s18, 256, %s167_s2, [#allocation4], %s128_s12, %s128_s12, %s129_s13  }
  0xb9   :  { %125 = dma.done.wait [#allocation4], 256  }
  0xba   :  { %126 = vsyncadd [#allocation4], 4294967040 }
  0xbb   :  { %72 = vsyncpa [#allocation3], 1 }
  0xbc   :  { %73 = vsyncpa [#allocation4], 1 }

</bundles_post_ra>
